<compile_context>
chip_gen: v7x
topology: tpu7x:2x2x1
jax: 0.10.0
libtpu: 0.0.40
codegen_flags: <defaults>
</compile_context>

<pallas_src>
import jax
import jax.numpy as jnp
from jax.experimental import pallas as pl
from jax.experimental.pallas import tpu as pltpu


def _round_up(x, m):
    return ((x + m - 1) // m) * m


def _round_down(x, m):
    return (x // m) * m


def _pick_batch_tile(B, target=64):
    """Batch tile: multiple of 8, divides the (possibly padded) batch, and
    leaves >=2 batch tiles when possible so v7x's second core is used."""
    if B <= 8:
        return B, B                           # full-dim block, no padding
    B_pad = _round_up(B, 8)
    tb = min(_round_up(target, 8), B_pad)
    if B_pad // tb < 2:                       # keep the parallel axis >= 2 tiles
        tb = max(8, _round_down(B_pad // 2, 8))
    B_pad = _round_up(B_pad, tb)              # tb | B_pad
    return tb, B_pad


def _pick_seq_tile(S, target, align):
    """Sequence chunk: prefer a divisor of S (so jnp.pad is a no-op); fall
    back to zero-padding S (zeros do not perturb the sum)."""
    target = max(int(target), align)
    if S <= target:
        return S, S                           # single chunk, full-dim block
    t = max(_round_down(min(target, S), align), align)
    cand = t
    while cand >= align:
        if S % cand == 0:
            return cand, S                    # exact divisor -> no pad
        cand -= align
    return t, _round_up(S, t)                 # fallback: zero-pad S


def _resident_spec(shape):
    # Constant index map -> single DMA; single-buffer it so the duplicate
    # buffer's VMEM goes to the streamed hidden-state tiles instead.
    try:
        return pl.BlockSpec(shape, lambda bi, si: (0, 0),
                            pipeline_mode=pl.Buffered(1))
    except TypeError:
        return pl.BlockSpec(shape, lambda bi, si: (0, 0))


def _text_encoder_kernel(h_ref, w_ref, b_ref, o_ref, acc_ref):
    # h_ref:   [TB, TS, H]  streamed S-chunk (native input dtype)
    # w_ref:   [H, E_pad]   bf16 resident, 1/S mean scale pre-folded
    # b_ref:   [1, E_pad]   f32  resident
    # o_ref:   [TB, E_pad]  f32  resident across the S grid axis
    # acc_ref: [TB, H]      f32  scratch: running sum over the sequence dim
    si = pl.program_id(1)

    @pl.when(si == 0)
    def _init():
        acc_ref[...] = jnp.zeros_like(acc_ref)

    # Per-chunk f32 accumulation (upcast in-register; mandatory on v5e where
    # the VPU has no bf16 math, free elsewhere).
    acc_ref[...] += jnp.sum(h_ref[...].astype(jnp.float32), axis=1)

    @pl.when(si == pl.num_programs(1) - 1)
    def _finalize():
        # 1/S is already folded into w, so the pooled sum feeds the MXU
        # directly (bf16 operands, f32 accumulation).
        pooled = acc_ref[...].astype(w_ref.dtype)                 # [TB, H]
        proj = jnp.dot(pooled, w_ref[...],
                       preferred_element_type=jnp.float32)        # [TB, E_pad]
        o_ref[...] = (proj + b_ref[...]).astype(o_ref.dtype)


def text_encoder_forward(hidden_states, w, b, *, tb=None, ts=None):
    """Mean-pool over the sequence dim + Linear(H -> E).

    hidden_states: [B, S, H]  (streamed in its native dtype, cast per-tile)
    w:             [H, E]     (projection weight, i.e. nn.Linear weight^T)
    b:             [E]
    returns        [B, E] float32
    """
    B, S, H = hidden_states.shape
    Hw, E = w.shape
    assert Hw == H, (Hw, H)

    h_bytes = hidden_states.dtype.itemsize
    s_align = 16 if h_bytes == 2 else 8       # bf16 packs 16 sublanes / vreg

    # ---- generation-aware VMEM budget -------------------------------------
    try:
        info = pltpu.get_tpu_info()
        vmem_cap = int(getattr(info, "vmem_capacity_bytes", 64 << 20))
    except Exception:
        vmem_cap = 64 << 20                   # conservative fallback
    small_vmem = vmem_cap < (96 << 20)        # v7x-class (64 MiB physical)
    vmem_ceiling = (56 << 20) if small_vmem else (100 << 20)
    h_buf_budget = (16 << 20) if small_vmem else (28 << 20)   # per h buffer

    # ---- tile choices (avoid full-array pads where possible) --------------
    if tb is None:
        tb, B_pad = _pick_batch_tile(B, target=64)
    else:
        tb = B if B <= 8 else min(_round_up(tb, 8), _round_up(B, 8))
        B_pad = _round_up(B, tb)
    if ts is None:
        ts_target = max(s_align, h_buf_budget // max(1, tb * H * h_bytes))
    else:
        ts_target = max(s_align, _round_up(min(ts, S), s_align))
    ts, S_pad = _pick_seq_tile(S, ts_target, s_align)

    E_pad = _round_up(max(E, 128), 128)       # lane-dense output (unmasked vst)

    # ---- parameters: fold the 1/S mean scale into the bf16 weight ---------
    w_p = jnp.pad((w.astype(jnp.float32) * (1.0 / S)).astype(jnp.bfloat16),
                  ((0, 0), (0, E_pad - E)))
    b_p = jnp.pad(b.astype(jnp.float32), (0, E_pad - E)).reshape(1, E_pad)

    # The big [B, S, H] tensor is streamed in its native dtype: no wrapper-side
    # cast pass.  Padding is a no-op when the tiles divide B and S (common case).
    h = hidden_states
    if (B_pad, S_pad) != (B, S):
        h = jnp.pad(h, ((0, B_pad - B), (0, S_pad - S), (0, 0)))

    grid = (B_pad // tb, S_pad // ts)         # (parallel batch, reduction last)

    # ---- exact VMEM accounting (+25% headroom), generation-aware ceiling ---
    exact = (2 * tb * ts * H * h_bytes        # streamed h tiles (double-buffered)
             + 2 * H * E_pad * 2              # weight (worst-case double buffer)
             + 2 * E_pad * 4                  # bias
             + 2 * tb * E_pad * 4             # output tile
             + tb * H * 4)                    # f32 accumulator scratch
    vmem_limit = int(min(vmem_ceiling,
                         max(16 << 20, exact * 5 // 4 + (2 << 20))))

    out = pl.pallas_call(
        _text_encoder_kernel,
        out_shape=jax.ShapeDtypeStruct((B_pad, E_pad), jnp.float32),
        grid_spec=pltpu.PrefetchScalarGridSpec(
            num_scalar_prefetch=0,
            grid=grid,
            in_specs=[
                pl.BlockSpec((tb, ts, H), lambda bi, si: (bi, si, 0)),
                _resident_spec((H, E_pad)),       # weight: resident
                _resident_spec((1, E_pad)),       # bias:   resident
            ],
            out_specs=pl.BlockSpec((tb, E_pad), lambda bi, si: (bi, 0)),
            scratch_shapes=[pltpu.VMEM((tb, H), jnp.float32)],
        ),
        compiler_params=pltpu.CompilerParams(
            dimension_semantics=("parallel", "arbitrary"),
            vmem_limit_bytes=vmem_limit,
        ),
    )(h, w_p, b_p)

    return out[:B, :E]


def reference_forward_matched(hidden_states, w, b):
    # Pure-JAX reference matching the kernel's numerics: f32 accumulation of
    # the raw hidden states, bf16 MXU operands (pooled sum and 1/S-folded
    # weight), f32 accumulate + bias.
    S = hidden_states.shape[1]
    pooled_sum = jnp.sum(hidden_states.astype(jnp.float32), axis=1)
    pooled_bf = pooled_sum.astype(jnp.bfloat16).astype(jnp.float32)
    w_bf = (w.astype(jnp.float32) * (1.0 / S)).astype(jnp.bfloat16)
    return pooled_bf @ w_bf.astype(jnp.float32) + b.astype(jnp.float32)


def reference_forward_f32(hidden_states, w, b):
    # Original module semantics in full f32.
    pooled = jnp.mean(hidden_states, axis=1)
    return pooled @ w + b


if __name__ == "__main__":
    # Small shapes standing in for distilbert (H=768, E=512) at toy scale:
    #   B = batch of texts, S = padded sequence length,
    #   H = bert hidden size, E = embedding_dim (projection output).
    B, S, H, E = 2, 16, 32, 16

    key = jax.random.PRNGKey(0)
    k_h, k_w, k_b = jax.random.split(key, 3)

    # Synthetic "bert_output.last_hidden_state"
    hidden_states = jax.random.normal(k_h, (B, S, H), dtype=jnp.float32)

    # Deterministic projection parameters (nn.Linear(H, E)), stored as [H, E]
    w = jax.random.normal(k_w, (H, E), dtype=jnp.float32) * (1.0 / jnp.sqrt(H))
    b = jax.random.normal(k_b, (E,), dtype=jnp.float32) * 0.01

    # ts=8 -> two S-chunks, exercising the streamed accumulator path.
    out = text_encoder_forward(hidden_states, w, b, ts=8)
    out = jax.block_until_ready(out)

    assert out.shape == (B, E), out.shape

    ref = reference_forward_matched(hidden_states, w, b)
    assert jnp.allclose(out, ref, atol=2e-3, rtol=2e-3), \
        float(jnp.max(jnp.abs(out - ref)))

    # Loose check against the original full-f32 module semantics (only the
    # bf16 MXU operands introduce quantization now that transport stays f32).
    ref32 = reference_forward_f32(hidden_states, w, b)
    assert jnp.allclose(out, ref32, atol=5e-2, rtol=5e-2), \
        float(jnp.max(jnp.abs(out - ref32)))

    print("KERNEL_OK")
</pallas_src>

<mosaic_0001>
module attributes {stable_mosaic.version = 11 : i64} {
  func.func @_text_encoder_kernel(%arg0: i32, %arg1: i32, %arg2: memref<2x8x32xf32, #tpu.memory_space<vmem>>, %arg3: memref<32x128xbf16, #tpu.memory_space<vmem>>, %arg4: memref<1x128xf32, #tpu.memory_space<vmem>>, %arg5: memref<2x128xf32, #tpu.memory_space<vmem>>, %arg6: memref<2x32xf32, #tpu.memory_space<vmem>>) attributes {dimension_semantics = [#tpu.dimension_semantics<parallel>, #tpu.dimension_semantics<arbitrary>], iteration_bounds = array<i64: 1, 2>, scalar_prefetch = 0 : i64, scratch_operands = 1 : i64, tpu.core_type = #tpu.core_type<tc>, window_params = [{transform_indices = @transform_0, window_bounds = array<i64: 2, 8, 32>}, {pipeline_mode = #tpu.pipeline_mode<synchronous>, transform_indices = @transform_1, window_bounds = array<i64: 32, 128>}, {pipeline_mode = #tpu.pipeline_mode<synchronous>, transform_indices = @transform_2, window_bounds = array<i64: 1, 128>}, {transform_indices = @transform_3, window_bounds = array<i64: 2, 128>}]} {
    %c0_i32 = arith.constant 0 : i32
    %0 = arith.cmpi eq, %arg1, %c0_i32 : i32
    %1 = arith.extui %0 : i1 to i32
    %c0_i32_0 = arith.constant 0 : i32
    %2 = arith.cmpi ne, %1, %c0_i32_0 : i32
    scf.if %2 {
      %cst_8 = arith.constant 0.000000e+00 : f32
      %11 = vector.broadcast %cst_8 : f32 to vector<2x32xf32>
      %c0_9 = arith.constant 0 : index
      %c0_10 = arith.constant 0 : index
      %12 = vector.load %arg6[%c0_9, %c0_10] : memref<2x32xf32, #tpu.memory_space<vmem>>, vector<2x32xf32>
      tpu.vector_store %arg6[%c0_9, %c0_10], %11 {strides = array<i32>} : memref<2x32xf32, #tpu.memory_space<vmem>>, vector<2x32xf32>,
    } else {
    }
    %c0 = arith.constant 0 : index
    %c0_1 = arith.constant 0 : index
    %3 = vector.load %arg6[%c0, %c0_1] : memref<2x32xf32, #tpu.memory_space<vmem>>, vector<2x32xf32>
    %c0_2 = arith.constant 0 : index
    %c0_3 = arith.constant 0 : index
    %c0_4 = arith.constant 0 : index
    %4 = vector.load %arg2[%c0_2, %c0_3, %c0_4] : memref<2x8x32xf32, #tpu.memory_space<vmem>>, vector<2x8x32xf32>
    %cst = arith.constant dense<0.000000e+00> : vector<2x32xf32>
    %5 = vector.multi_reduction <add>, %4, %cst [1] : vector<2x8x32xf32> to vector<2x32xf32>
    %6 = arith.addf %3, %5 : vector<2x32xf32>
    %c0_5 = arith.constant 0 : index
    %c0_6 = arith.constant 0 : index
    %7 = vector.load %arg6[%c0_5, %c0_6] : memref<2x32xf32, #tpu.memory_space<vmem>>, vector<2x32xf32>
    tpu.vector_store %arg6[%c0_5, %c0_6], %6 {strides = array<i32>} : memref<2x32xf32, #tpu.memory_space<vmem>>, vector<2x32xf32>,
    %c1_i32 = arith.constant 1 : i32
    %8 = arith.cmpi eq, %arg1, %c1_i32 : i32
    %9 = arith.extui %8 : i1 to i32
    %c0_i32_7 = arith.constant 0 : i32
    %10 = arith.cmpi ne, %9, %c0_i32_7 : i32
    scf.if %10 {
      %c0_8 = arith.constant 0 : index
      %c0_9 = arith.constant 0 : index
      %11 = vector.load %arg6[%c0_8, %c0_9] : memref<2x32xf32, #tpu.memory_space<vmem>>, vector<2x32xf32>
      %12 = arith.truncf %11 : vector<2x32xf32> to vector<2x32xbf16>
      %c0_10 = arith.constant 0 : index
      %c0_11 = arith.constant 0 : index
      %13 = vector.load %arg3[%c0_10, %c0_11] : memref<32x128xbf16, #tpu.memory_space<vmem>>, vector<32x128xbf16>
      %cst_12 = arith.constant dense<0.000000e+00> : vector<2x128xf32>
      %14 = tpu.matmul %12, %13, %cst_12 {dimension_numbers = #tpu.dot_dimension_numbers<[1], [0], [0], [1], [0, 0, 1, 1], [], []>} : vector<2x32xbf16>, vector<32x128xbf16>, vector<2x128xf32> -> vector<2x128xf32>
      %c0_13 = arith.constant 0 : index
      %c0_14 = arith.constant 0 : index
      %15 = vector.load %arg4[%c0_13, %c0_14] : memref<1x128xf32, #tpu.memory_space<vmem>>, vector<1x128xf32>
      %16 = vector.broadcast %15 : vector<1x128xf32> to vector<2x128xf32>
      %17 = arith.addf %14, %16 : vector<2x128xf32>
      %c0_15 = arith.constant 0 : index
      %c0_16 = arith.constant 0 : index
      %18 = vector.load %arg5[%c0_15, %c0_16] : memref<2x128xf32, #tpu.memory_space<vmem>>, vector<2x128xf32>
      tpu.vector_store %arg5[%c0_15, %c0_16], %17 {strides = array<i32>} : memref<2x128xf32, #tpu.memory_space<vmem>>, vector<2x128xf32>,
    } else {
    }
    return
  }
  func.func @transform_0(%arg0: i32, %arg1: i32) -> (i32, i32, i32) {
    %c0_i32 = arith.constant 0 : i32
    %c0_i32_0 = arith.constant 0 : i32
    return %arg0, %arg1, %c0_i32 : i32, i32, i32
  }
  func.func @transform_1(%arg0: i32, %arg1: i32) -> (i32, i32) {
    %c0_i32 = arith.constant 0 : i32
    %c0_i32_0 = arith.constant 0 : i32
    %c0_i32_1 = arith.constant 0 : i32
    return %c0_i32, %c0_i32_0 : i32, i32
  }
  func.func @transform_2(%arg0: i32, %arg1: i32) -> (i32, i32) {
    %c0_i32 = arith.constant 0 : i32
    %c0_i32_0 = arith.constant 0 : i32
    %c0_i32_1 = arith.constant 0 : i32
    return %c0_i32, %c0_i32_0 : i32, i32
  }
  func.func @transform_3(%arg0: i32, %arg1: i32) -> (i32, i32) {
    %c0_i32 = arith.constant 0 : i32
    %c0_i32_0 = arith.constant 0 : i32
    return %arg0, %c0_i32 : i32, i32
  }
}

</mosaic_0001>

<bundles_post_ra>
// kernel: tpu_custom_call.1
= control target key start
LH: loop header
LB: loop body
LE: loop exit
PB: predicated region body
PF: predicated region fallthrough
CT: control target
= control target key end

     0   :  { %8 = vsyncpa [#allocation4], 0  ;;  %s883_s0 = inlined_call_operand.hbm [shape: f32[2,16,32], index: 0, kind: input, shape index: {}]   ;;  %s884_s1 = inlined_call_operand.hbm [shape: bf16[32,128], index: 1, kind: input, shape index: {}]   ;;  %s885_s2 = inlined_call_operand.vmem [shape: f32[1,128], index: 2, kind: input, shape index: {}]   ;;  %s886_s3 = inlined_call_operand.hbm [shape: f32[2,128], index: 3, kind: output, shape index: {}]  }
   0x1   :  { %10 = vsyncpa [#allocation4 + $0x1], 0 }
   0x2   :  { %11 = vsyncpa [#allocation7], 0 }
   0x3   :  { %12 = vsyncpa [#allocation5], 0  ;;  %s690_s12 = smov 0   ;;  %s692_s13 = smov 0  }
   0x4   :  { %s694_s14 = smov 0   ;;  %s696_s15 = smov 0  }
   0x5   :  { %s698_s16 = smov 0   ;;  %s700_s17 = smov 0  }
   0x6 LB: > { %s402_s18 = sadd.s32 4294967295, %s657_s17   ;;  %p46_p0 = scmp.ne.s32.totalorder %s645_s14, %s641_s13  ;;  %s657_s17 = sphi %s700_s17, %s18_s17   ;;  %s653_s16 = sphi %s698_s16, %s907_s16   ;;  %s649_s15 = sphi %s696_s15, %s906_s15   ;;  %s645_s14 = sphi %s694_s14, %s905_s14   ;;  %s641_s13 = sphi %s692_s13, %s904_s13   ;;  %s637_s12 = sphi %s690_s12, %s903_s12  }
   0x7   : > { %p47_p1 = scmp.eq.s32.totalorder %s657_s17, 0  ;;  %p52_p2 = scmp.ne.s32.totalorder %s641_s13, %s637_s12 }
   0x8   : > { %p725_p3 = scmp.eq.s32.totalorder %s402_s18, 0  ;;  %p403_p4 = scmp.ge.s32.totalorder %s657_s17, 1 }
   0x9   : > { %p48_p5 = por %p47_p1, %p46_p0  ;;  %p131_p6 = scmp.lt.s32.totalorder %s657_s17, 3 }
   0xa   : > { %s892_s19 = scalar_select %p725_p3, 1, 0 }
   0xb   : > { %p733_p7 = por %p725_p3, %p52_p2  ;;  %p737_p8 = pnand %p403_p4, %p131_p6 }
   0xc   : > { %s659_s22 = smov [#allocation6]   ;;  %p451_p11 = scmp.lt.s32.totalorder %s657_s17, 2 }
   0xd   : > { %s893_s20 = scalar_select %p733_p7, 1, 0 }
   0xe   : > { %s894_s21 = scalar_select %p737_p8, 1, 0 }
   0xf   : > { %s143_s23 = sshll.u32 %s659_s22, 4  ;;  %p442_p9 = pneg %p737_p8  ;;  %s144_s23 = int_to_ptr.vmem [resolvable:$true] %s143_s23 }
  0x10   : > { %s39_s25 = sadd.s32 1, %s645_s14  ;;  %p751_p12 = pnand %p451_p11, %p48_p5 }
  0x11   : > { %p745_p10 = pnand %p442_p9, %p725_p3  ;;  %s515_s29 = scalar_lea.hbm %s884_s1, 256 }
  0x12   : > { %s896_s26 = scalar_select %p751_p12, 1, 0 }
  0x13   : > { %p516_p13 = scmp.ne.s32.totalorder %s884_s1, %s515_s29  ;;  %p517_p0 = pneg %p745_p10 }
  0x14   : > { %p522_p4 = scmp.lt.u32.totalorder %s515_s29, %s884_s1 }
  0x15   : > { %p518_p1 = pnand %p517_p0, %p516_p13 }
  0x17   : > { %p519_p2 = pneg %p518_p1 }
  0x19   : > { %p524_p5 = pnand %p522_p4, %p519_p2 }
  0x1b   : > { %527 = shalt.err (!%p524_p5)
}
  0x1c   : > { %s528_s7 = scalar_lea.vmem %s144_s23, 256  ;;  %p536_p3 = scmp.lt.s32.totalorder %s144_s23, %s144_s23 }
  0x1d   : > { %p529_p6 = scmp.ne.s32.totalorder %s144_s23, %s528_s7  ;;  %p537_p7 = scmp.lt.s32.totalorder %s528_s7, %s528_s7 }
  0x1f   : > { %p531_p9 = pnand %p529_p6, %p517_p0  ;;  %p538_p8 = por %p537_p7, %p536_p3 }
  0x21   : > { %p532_p11 = pneg %p531_p9 }
  0x23   : > { %p539_p12 = pnand %p538_p8, %p532_p11 }
  0x25   : > { %542 = shalt.err (!%p539_p12)
}
  0x26   : > { %s660_s8 = smov 64   ;;  %s661_s9 = smov 4  }
  0x27   : > { %445 = dma.hbm_to_vmem [thread:$0]  (!%p745_p10), %s884_s1, 256, %s144_s23, [#allocation7], %s660_s8, %s660_s8, %s661_s9  }
  0x28   : > { %s27_s12 = sadd.s32 1, %s653_s16  ;;  %s160_s22 = sand.u32 1, %s645_s14  }
  0x29   : > { %p28_p3 = scmp.ge.s32.totalorder %s27_s12, 2  ;;  %s406_s27 = sshll.u32 %s160_s22, 4 }
  0x2a   : > { %s407_s28 = sshll.u32 %s653_s16, 7  ;;  %s164_s23 = scalar_lea.vmem [#allocation3], %s406_s27 }
  0x2b   : > { %s909_s12 = smov (%p28_p3, %s27_s12), 0  ;;  %s779_s4 = scalar_lea.hbm %s883_s0, %s407_s28 }
  0x2c   : > { %s35_s24 = ssub.s32 %s653_s16, %s909_s12  ;;  %s173_s5 = sshll.u32 %s164_s23, 4  ;;  %s783_s5 = int_to_ptr.vmem [resolvable:$true] %s173_s5 }
  0x2d   : > { %p37_p7 = scmp.eq.s32.totalorder %s35_s24, 0  ;;  %s790_s7 = scalar_lea.sflag [#allocation4], %s160_s22 }
  0x2e   : > { %s543_s8 = scalar_lea.hbm %s779_s4, 256  ;;  %p897_p10 = scmp.ne.s32.totalorder %s896_s26, 0 }
  0x2f   : > { %s788_s6 = scalar_select %p37_p7, %s645_s14, %s39_s25  }
  0x30   : > { %p544_p8 = scmp.ne.s32.totalorder %s779_s4, %s543_s8  ;;  %p545_p12 = pneg %p897_p10 }
  0x31   : > { %s548_s11 = scalar_lea.hbm %s883_s0, 512  ;;  %p549_p1 = scmp.lt.u32.totalorder %s779_s4, %s883_s0 }
  0x32   : > { %p546_p13 = pnand %p545_p12, %p544_p8  ;;  %p550_p2 = scmp.lt.u32.totalorder %s548_s11, %s543_s8 }
  0x33   : > { %p552_p5 = scmp.lt.u32.totalorder %s543_s8, %s779_s4 }
  0x34   : > { %p547_p0 = pneg %p546_p13  ;;  %p551_p4 = por %p550_p2, %p549_p1 }
  0x36   : > { %p553_p6 = por %p552_p5, %p551_p4 }
  0x38   : > { %p554_p9 = pnand %p553_p6, %p547_p0 }
  0x3a   : > { %557 = shalt.err (!%p554_p9)
}
  0x3b   : > { %s558_s25 = scalar_lea.vmem %s783_s5, 256  ;;  %s662_s22 = smov [#allocation3]  }
  0x3c   : > { %p559_p11 = scmp.ne.s32.totalorder %s783_s5, %s558_s25  ;;  %s563_s29 = sshll.u32 %s662_s22, 4  ;;  %s564_s29 = int_to_ptr.vmem [resolvable:$false] %s563_s29 }
  0x3d   : > { %s565_s30 = scalar_lea.vmem %s564_s29, 512  ;;  %p566_p8 = scmp.lt.s32.totalorder %s783_s5, %s564_s29 }
  0x3e   : > { %p561_p3 = pnand %p559_p11, %p545_p12  ;;  %p567_p13 = scmp.lt.s32.totalorder %s565_s30, %s558_s25 }
  0x40   : > { %p562_p7 = pneg %p561_p3  ;;  %p568_p1 = por %p567_p13, %p566_p8 }
  0x42   : > { %p569_p2 = pnand %p568_p1, %p562_p7 }
  0x44   : > { %572 = shalt.err (!%p569_p2)
}
  0x45   : > { %s663_s24 = smov 256   ;;  %s664_s23 = smov 128  }
  0x46   : > { %s665_s8 = smov 8   ;;  %p898_p12 = scmp.ne.s32.totalorder %s894_s21, 0 }
  0x47   : > { %449 = dma.hbm_to_vmem [thread:$0]  (!%p897_p10), %s779_s4, 256, %s783_s5, %s790_s7, %s663_s24, %s664_s23, %s665_s8  }
  0x48   : > { %185 = sbr.rel (%p898_p12) target bundleno = 359 (0x167), region = 32  ;;  %s187_s9 = sand.u32 (!%p898_p12), 1, %s641_s13  }
  0x49   : > { %s409_s10 = sshll.u32 (!%p898_p12), %s187_s9, 4  ;;  %s188_s11 = scalar_lea.sflag (!%p898_p12), [#allocation4], %s187_s9 }
  0x4a   : > { %s191_s27 = scalar_lea.vmem (!%p898_p12), [#allocation3], %s409_s10  ;;  %p899_p0 = scmp.ne.s32.totalorder (!%p898_p12), %s893_s20, 0 }
  0x4f   : > { %624 = dma.done.wait (%p899_p0), %s188_s11, 256  }
  0x50   : > { %626 = vsyncadd (%p899_p0), %s188_s11, 4294967040  ;;  %p900_p4 = scmp.ne.s32.totalorder %s892_s19, 0 }
  0x52   : > { %628 = dma.done.wait (%p900_p4), [#allocation7], 256  }
  0x53   : > { %630 = vsyncadd (%p900_p4), [#allocation7], 4294967040  ;;  %p411_p10 = scmp.ne.s32.totalorder %s649_s15, 0 }
  0x54   : > { %vm219_vm0 = vcmask (!%p411_p10), 254976   ;;  %v666_v0 = vmov (!%p411_p10), 0.0  }
  0x55   : > { %218 = sbr.rel (%p411_p10) target bundleno = 92 (0x5c), region = 44  ;;  %220 = vst.msk [vmem:[#allocation2] sm:$0x3] (!%p411_p10), %vm219_vm0, %v666_v0 }
  0x5c PF: > { %v222_v1 = vld [vmem:[%s191_s27] sm:$0xff]  ;;  %v223_v2 = vld [vmem:[%s191_s27 + $0x8] sm:$0xff]  ;;  %vm224_vm1 = vcmask 261120   ;;  %vm241_vm2 = vcmask 1041409   ;;  %vm245_vm3 = vcmask 254976   ;;  %p412_p5 = scmp.ne.s32.totalorder %s649_s15, 1 }
  0x5d   : > { %v225_v3 = vsel %vm224_vm1, %v222_v1, 0.0  ;;  %v232_v4 = vsel %vm224_vm1, %v223_v2, 0.0  ;;  %v221_v15 = vld [vmem:[#allocation2] sm:$0x3]  ;;  %v513_v20 = vld [vmem:[#allocation6] sm:$0xff] (!%p412_p5)   ;;  %v667_v21 = vmov (!%p412_p5), 0.0  }
  0x5e   : > { %v226_v5 = vrot.slane %v225_v3, 4  ;;  %v233_v6 = vrot.slane %v232_v4, 4  ;;  %424 = vmatprep.subr.bf16.mxu0 (!%p412_p5), %v667_v21  ;;  %v514_v22 = vld [vmem:[#allocation6 + $0x8] sm:$0xff] (!%p412_p5)   ;;  %vm668_vm4 = vmmov (!%p412_p5), 0   ;;  %v413_v25 = vld [vmem:[%s885_s2] ss:$0 sm:$0xff] (!%p412_p5) }
  0x5f   : > { %425 = vmatpush3.bf16.msra.mxu0 (!%p412_p5), %v513_v20  ;;  %428 = vmatprep.mubr.msk.bf16.mxu0 (!%p412_p5), %vm668_vm4, %v667_v21 }
  0x60   : > { %v227_v7 = vadd.f32 %v226_v5, %v225_v3  ;;  %v234_v8 = vadd.f32 %v233_v6, %v232_v4  ;;  %426 = vmatprep.subr.bf16.mxu0 (!%p412_p5), %v667_v21 }
  0x62   : > { %v228_v9 = vrot.slane %v227_v7, 2  ;;  %v235_v10 = vrot.slane %v234_v8, 2 }
  0x63   : > { %427 = vmatpush3.bf16.msra.mxu0 (!%p412_p5), %v514_v22 }
  0x64   : > { %v229_v11 = vadd.f32 %v228_v9, %v227_v7  ;;  %v236_v12 = vadd.f32 %v235_v10, %v234_v8 }
  0x66   : > { %v230_v13 = vrot.slane %v229_v11, 1  ;;  %v237_v14 = vrot.slane %v236_v12, 1 }
  0x67   : > { %250 = sbr.rel (%p412_p5) target bundleno = 334 (0x14e), region = 48 }
  0x68   : > { %v231_v16 = vadd.f32 %v230_v13, %v229_v11  ;;  %v238_v17 = vadd.f32 %v237_v14, %v236_v12 }
  0x6a   : > { %v242_v18 = vsel %vm241_vm2, %v238_v17, %v231_v16 }
  0x6b   : > { %v244_v19 = vadd.f32 %v242_v18, %v221_v15 }
  0x6d   : > { %246 = vst.msk [vmem:[#allocation2] sm:$0x3] %vm245_vm3, %v244_v19 }
  0x74   : > { %v251_v23 = vld [vmem:[#allocation2] sm:$0x3] }
  0x75   : > { %v252_v24 = vpack.c.bf16 %v251_v23, %v251_v23 }
  0x77   : > { %429 = vmatmul.mubr.msk.bf16.vlgmr.msra.gmra.mrb[0].mxu0 %vm224_vm1, %v252_v24 }
 0x14a   : > { %v313_v26 = vpop.f32.mrb[0].mxu0 }
 0x14b   : > { %v314_v27 = vadd.f32 %v413_v25, %v313_v26  ;;  %v430_v28 = vpop.f32.mrb[1].mxu0 }
 0x14c   : > { %v316_v29 = vpop.f32.mrb[2].mxu0 }
 0x14d   : > { %319 = vst [vmem:[#allocation8] sm:$0x3] %v314_v27  ;;  %v431_v30 = vpop.f32.mrb[3].mxu0 }
 0x14e PF: > { %p839_p6 = scmp.eq.s32.totalorder %s402_s18, 1  ;;  %s669_s21 = smov [#allocation8]  }
 0x14f   : > { %s329_s26 = sshll.u32 %s669_s21, 4  ;;  %s330_s26 = int_to_ptr.vmem [resolvable:$true] %s329_s26 }
 0x150   : > { %s573_s4 = scalar_lea.vmem %s330_s26, 32  ;;  %p580_p7 = scmp.lt.s32.totalorder %s330_s26, %s330_s26 }
 0x151   : > { %p574_p9 = scmp.ne.s32.totalorder %s330_s26, %s573_s4  ;;  %p581_p8 = scmp.lt.s32.totalorder %s573_s4, %s573_s4 }
 0x153   : > { %p575_p11 = pnand %p574_p9, %p839_p6  ;;  %p582_p13 = por %p581_p8, %p580_p7 }
 0x155   : > { %p576_p3 = pneg %p575_p11 }
 0x157   : > { %p583_p1 = pnand %p582_p13, %p576_p3 }
 0x159   : > { %586 = shalt.err (!%p583_p1)
}
 0x15a   : > { %s587_s18 = scalar_lea.hbm %s886_s3, 32 }
 0x15b   : > { %p588_p2 = scmp.ne.s32.totalorder %s886_s3, %s587_s18  ;;  %p593_p4 = scmp.lt.u32.totalorder %s587_s18, %s886_s3 }
 0x15d   : > { %p589_p12 = pnand %p588_p2, %p839_p6 }
 0x15f   : > { %p590_p0 = pneg %p589_p12 }
 0x161   : > { %p595_p10 = pnand %p593_p4, %p590_p0 }
 0x163   : > { %598 = shalt.err (!%p595_p10)
}
 0x164   : > { %439 = dma.vmem_to_hbm [thread:$0]  (%p839_p6), %s330_s26, 32, %s886_s3, [#allocation5]  }
 0x165   : > { %632 = dma.done.wait (%p839_p6), [#allocation5], 32  }
 0x166   : > { %634 = vsyncadd (%p839_p6), [#allocation5], 4294967264 }
 0x167 PF: > { %s18_s17 = sadd.s32 1, %s657_s17   ;;  %s902_s23 = smov %s909_s12 }
 0x168   : > { %p15_p5 = scmp.ge.s32.totalorder %s18_s17, 4   ;;  %s903_s12 = smov %s641_s13 }
 0x169   : > { %s904_s13 = smov %s645_s14  ;;  %s905_s14 = smov %s788_s6 }
 0x16a   : > { %s906_s15 = smov %s653_s16  ;;  %s907_s16 = smov %s902_s23 }
 0x16b   :  { %17 = sbr.rel (!%p15_p5) target bundleno = 6 (0x6), region = 82 }
 0x172   :  { %342 = vsyncpa [#allocation4], 1 }
 0x173   :  { %344 = vsyncpa [#allocation4 + $0x1], 1 }
 0x174   :  { %345 = vsyncpa [#allocation7], 1 }
 0x175   :  { %346 = vsyncpa [#allocation5], 1 }
 0x176   :  { %348 = vsyncpa [#allocation5 + $0x1], 1 }

</bundles_post_ra>
